<compile_context>
chip_gen: v6e
topology: v6e:2x2x1
jax: 0.10.0
libtpu: 0.0.40
codegen_flags: <defaults>
</compile_context>

<pallas_src>
import functools

import jax
import jax.numpy as jnp
from jax.experimental import pallas as pl
from jax.experimental.pallas import tpu as pltpu

_SUBLANE = 8


def _ssam_kernel(x_ref, coords_ref, o_ref):
    # x_ref:      (TR, HW) tile of flattened feature maps (input dtype).
    # coords_ref: (2, HW)  row 0 = xc, row 1 = yc (VMEM-resident across steps).
    # o_ref:      (TR, 2)  -> [x_mean, y_mean] per row.
    x = x_ref[...].astype(jnp.float32)

    # Numerically-stable softmax *numerator*; normalization is deferred so the
    # (TR, HW) probability tensor is never materialized.  NOTE: the max
    # subtraction also bounds exp() on the garbage rows of a partial last
    # block (their outputs are masked on writeback) -- do not remove it.
    m = jnp.max(x, axis=-1, keepdims=True)
    e = jnp.exp(x - m)

    xc = coords_ref[0:1, :]  # (1, HW)
    yc = coords_ref[1:2, :]  # (1, HW)

    s_e = jnp.sum(e, axis=-1, keepdims=True)       # (TR, 1)
    s_x = jnp.sum(e * xc, axis=-1, keepdims=True)  # (TR, 1)
    s_y = jnp.sum(e * yc, axis=-1, keepdims=True)  # (TR, 1)

    # Exact reciprocal (VPU divide) on a tiny (TR, 1) tensor: negligible cost,
    # keeps results bit-close to the f32 reference, and adds no EUP work.
    inv = pl.reciprocal(s_e, approx=False)

    # Write the two output columns directly; no cross-lane concatenate.
    o_ref[:, 0:1] = (s_x * inv).astype(o_ref.dtype)
    o_ref[:, 1:2] = (s_y * inv).astype(o_ref.dtype)


def _vmem_capacity_bytes():
    """Physical VMEM per TensorCore; conservative fallback if the query fails."""
    try:
        cap = int(getattr(pltpu.get_tpu_info(), "vmem_capacity_bytes", 0))
        if cap > 0:
            return cap
    except Exception:
        pass
    return 64 * 1024 * 1024  # v7x-sized: safe lower bound on every generation


def _plan_tiling(n, hw, itemsize):
    """Pick (row_tile, grid_steps, vmem_limit_bytes).

    * vmem_limit: ~3/4 of physical VMEM, capped at 96 MiB
      (v5e/v6e -> 96 MiB of 128, v7x -> 48 MiB of 64).
    * row tile: double-buffered input + ~4 f32-sized temporaries (upcast, e,
      products) must fit in ~80% of that limit.
    * steps: an even count of near-equal tiles so v7x's two TensorCores get
      balanced halves of the "parallel" row axis (harmless on 1-TC chips).
    """
    vmem_cap = _vmem_capacity_bytes()
    vmem_limit = min((vmem_cap * 3) // 4, 96 * 1024 * 1024)

    # VMEM bytes per input element of one block: 2x double-buffered input plus
    # up to ~4 f32 temporaries the compiler may keep live simultaneously.
    bytes_per_elem = 2 * itemsize + 16
    tr_max = ((vmem_limit * 4) // 5) // (bytes_per_elem * hw)
    tr_max = max(_SUBLANE, (tr_max // _SUBLANE) * _SUBLANE)
    # TODO(synk): if even an 8-row block exceeds the budget (HW in the hundreds
    # of thousands), chunk HW on an inner "arbitrary" axis (flash-style running
    # rescale) instead of just raising vmem_limit below.

    if n <= _SUBLANE:
        return n, 1, int(vmem_limit)

    steps = pl.cdiv(n, tr_max)             # fewest steps respecting the budget
    steps = 2 * pl.cdiv(steps, 2)          # even step count for 2-TC balance
    tr = min(n, _SUBLANE * pl.cdiv(pl.cdiv(n, steps), _SUBLANE))
    grid_steps = pl.cdiv(n, tr)

    # Degenerate huge-HW case (tr clamped to the 8-row floor): raise the
    # requested limit toward physical so the compiler still has headroom.
    need = (bytes_per_elem * tr * hw * 5) // 4
    if need > vmem_limit:
        vmem_limit = min(need, (vmem_cap * 15) // 16)

    return tr, grid_steps, int(vmem_limit)


@functools.partial(jax.jit, static_argnames=("normalize",))
def spatial_soft_argmax(x, normalize=True):
    """x: (B, C, H, W) float array. Returns (B, C, 2) float32 [x_mean, y_mean]."""
    b, c, h, w = x.shape
    n = b * c
    hw = h * w

    # Coordinate grids fused into a single (2, HW) operand: one DMA on step 0,
    # then VMEM-resident (constant index_map) for the rest of the grid.
    if normalize:
        ys = jnp.linspace(-1.0, 1.0, h, dtype=jnp.float32)
        xs = jnp.linspace(-1.0, 1.0, w, dtype=jnp.float32)
    else:
        ys = jnp.arange(h, dtype=jnp.float32)
        xs = jnp.arange(w, dtype=jnp.float32)
    yc, xc = jnp.meshgrid(ys, xs, indexing="ij")           # each (H, W)
    coords = jnp.stack([xc.reshape(-1), yc.reshape(-1)])   # (2, HW) f32
    # TODO(synk): for normalize=False with very large H*W, plain f32
    # coord-weighted sums lose precision; use chunked/pairwise accumulation if
    # that case ever matters.

    # Keep the input in its original dtype in HBM (bf16 stays bf16); the
    # kernel upcasts to f32 internally.
    x_flat = x.reshape(n, hw)

    tr, steps, vmem_limit = _plan_tiling(n, hw, x.dtype.itemsize)

    out = pl.pallas_call(
        _ssam_kernel,
        out_shape=jax.ShapeDtypeStruct((n, 2), jnp.float32),
        grid_spec=pltpu.PrefetchScalarGridSpec(
            num_scalar_prefetch=0,
            grid=(steps,),
            in_specs=[
                pl.BlockSpec((tr, hw), lambda i: (i, 0)),
                pl.BlockSpec((2, hw), lambda i: (0, 0)),
            ],
            out_specs=pl.BlockSpec((tr, 2), lambda i: (i, 0)),
        ),
        compiler_params=pltpu.CompilerParams(
            dimension_semantics=("parallel",),
            vmem_limit_bytes=vmem_limit,
        ),
    )(x_flat, coords)

    return out.reshape(b, c, 2)


def _reference(x, normalize=True):
    b, c, h, w = x.shape
    p = jax.nn.softmax(x.reshape(-1, h * w).astype(jnp.float32), axis=-1)
    if normalize:
        ys = jnp.linspace(-1.0, 1.0, h, dtype=jnp.float32)
        xs = jnp.linspace(-1.0, 1.0, w, dtype=jnp.float32)
    else:
        ys = jnp.arange(h, dtype=jnp.float32)
        xs = jnp.arange(w, dtype=jnp.float32)
    yc, xc = jnp.meshgrid(ys, xs, indexing="ij")
    x_mean = jnp.sum(p * xc.reshape(1, -1), axis=1, keepdims=True)
    y_mean = jnp.sum(p * yc.reshape(1, -1), axis=1, keepdims=True)
    return jnp.concatenate([x_mean, y_mean], axis=1).reshape(-1, c, 2)


if __name__ == "__main__":
    key = jax.random.PRNGKey(0)

    # Small shape consistent with the module spec.
    B, C, H, W = 2, 4, 16, 16
    x = jax.random.normal(key, (B, C, H, W), dtype=jnp.float32)

    out = jax.block_until_ready(spatial_soft_argmax(x, normalize=True))
    ref = _reference(x, normalize=True)
    assert out.shape == (B, C, 2)
    assert jnp.allclose(out, ref, atol=1e-5, rtol=1e-5)

    # normalize=False path (pixel coordinates).
    out_px = jax.block_until_ready(spatial_soft_argmax(x, normalize=False))
    ref_px = _reference(x, normalize=False)
    assert jnp.allclose(out_px, ref_px, atol=1e-4, rtol=1e-5)

    # Larger row count: two balanced grid steps (640 -> 320 + 320).
    x2 = jax.random.normal(jax.random.PRNGKey(0), (8, 80, 16, 16), jnp.float32)
    out2 = jax.block_until_ready(spatial_soft_argmax(x2, normalize=True))
    ref2 = _reference(x2, normalize=True)
    assert out2.shape == (8, 80, 2)
    assert jnp.allclose(out2, ref2, atol=1e-5, rtol=1e-5)

    # Non-multiple-of-8 row count exercising a partial last block (96 + 84).
    x3 = jax.random.normal(jax.random.PRNGKey(0), (2, 90, 16, 16), jnp.float32)
    out3 = jax.block_until_ready(spatial_soft_argmax(x3, normalize=True))
    ref3 = _reference(x3, normalize=True)
    assert out3.shape == (2, 90, 2)
    assert jnp.allclose(out3, ref3, atol=1e-5, rtol=1e-5)

    print("KERNEL_OK")
</pallas_src>

<mosaic_0001>
module attributes {stable_mosaic.version = 11 : i64} {
  func.func @_ssam_kernel(%arg0: i32, %arg1: memref<8x256xf32, #tpu.memory_space<vmem>>, %arg2: memref<2x256xf32, #tpu.memory_space<vmem>>, %arg3: memref<8x2xf32, #tpu.memory_space<vmem>>) attributes {dimension_semantics = [#tpu.dimension_semantics<parallel>], iteration_bounds = array<i64: 1>, scalar_prefetch = 0 : i64, scratch_operands = 0 : i64, tpu.core_type = #tpu.core_type<tc>, window_params = [{transform_indices = @transform_0, window_bounds = array<i64: 8, 256>}, {pipeline_mode = #tpu.pipeline_mode<synchronous>, transform_indices = @transform_1, window_bounds = array<i64: 2, 256>}, {transform_indices = @transform_2, window_bounds = array<i64: 8, 2>}]} {
    %c0 = arith.constant 0 : index
    %c0_0 = arith.constant 0 : index
    %0 = vector.load %arg1[%c0, %c0_0] : memref<8x256xf32, #tpu.memory_space<vmem>>, vector<8x256xf32>
    %cst = arith.constant dense<0xFF800000> : vector<8xf32>
    %1 = vector.multi_reduction <maximumf>, %0, %cst [1] : vector<8x256xf32> to vector<8xf32>
    %2 = vector.shape_cast %1 : vector<8xf32> to vector<8x1xf32>
    %3 = vector.broadcast %2 : vector<8x1xf32> to vector<8x256xf32>
    %4 = arith.subf %0, %3 : vector<8x256xf32>
    %5 = math.exp %4 : vector<8x256xf32>
    %c0_1 = arith.constant 0 : index
    %c0_2 = arith.constant 0 : index
    %6 = vector.load %arg2[%c0_1, %c0_2] : memref<2x256xf32, #tpu.memory_space<vmem>>, vector<1x256xf32>
    %c1 = arith.constant 1 : index
    %c0_3 = arith.constant 0 : index
    %7 = vector.load %arg2[%c1, %c0_3] : memref<2x256xf32, #tpu.memory_space<vmem>>, vector<1x256xf32>
    %cst_4 = arith.constant dense<0.000000e+00> : vector<8xf32>
    %8 = vector.multi_reduction <add>, %5, %cst_4 [1] : vector<8x256xf32> to vector<8xf32>
    %9 = vector.shape_cast %8 : vector<8xf32> to vector<8x1xf32>
    %10 = vector.broadcast %6 : vector<1x256xf32> to vector<8x256xf32>
    %11 = arith.mulf %5, %10 : vector<8x256xf32>
    %cst_5 = arith.constant dense<0.000000e+00> : vector<8xf32>
    %12 = vector.multi_reduction <add>, %11, %cst_5 [1] : vector<8x256xf32> to vector<8xf32>
    %13 = vector.shape_cast %12 : vector<8xf32> to vector<8x1xf32>
    %14 = vector.broadcast %7 : vector<1x256xf32> to vector<8x256xf32>
    %15 = arith.mulf %5, %14 : vector<8x256xf32>
    %cst_6 = arith.constant dense<0.000000e+00> : vector<8xf32>
    %16 = vector.multi_reduction <add>, %15, %cst_6 [1] : vector<8x256xf32> to vector<8xf32>
    %17 = vector.shape_cast %16 : vector<8xf32> to vector<8x1xf32>
    %18 = tpu.reciprocal %9 : vector<8x1xf32> -> vector<8x1xf32>
    %19 = arith.mulf %13, %18 : vector<8x1xf32>
    %c0_7 = arith.constant 0 : index
    %c0_8 = arith.constant 0 : index
    %20 = vector.load %arg3[%c0_7, %c0_8] : memref<8x2xf32, #tpu.memory_space<vmem>>, vector<8x1xf32>
    tpu.vector_store %arg3[%c0_7, %c0_8], %19 {strides = array<i32>} : memref<8x2xf32, #tpu.memory_space<vmem>>, vector<8x1xf32>,
    %21 = arith.mulf %17, %18 : vector<8x1xf32>
    %c0_9 = arith.constant 0 : index
    %c1_10 = arith.constant 1 : index
    %22 = vector.load %arg3[%c0_9, %c1_10] : memref<8x2xf32, #tpu.memory_space<vmem>>, vector<8x1xf32>
    tpu.vector_store %arg3[%c0_9, %c1_10], %21 {strides = array<i32>} : memref<8x2xf32, #tpu.memory_space<vmem>>, vector<8x1xf32>,
    return
  }
  func.func @transform_0(%arg0: i32) -> (i32, i32) {
    %c0_i32 = arith.constant 0 : i32
    %c0_i32_0 = arith.constant 0 : i32
    return %arg0, %c0_i32 : i32, i32
  }
  func.func @transform_1(%arg0: i32) -> (i32, i32) {
    %c0_i32 = arith.constant 0 : i32
    %c0_i32_0 = arith.constant 0 : i32
    %c0_i32_1 = arith.constant 0 : i32
    return %c0_i32, %c0_i32_0 : i32, i32
  }
  func.func @transform_2(%arg0: i32) -> (i32, i32) {
    %c0_i32 = arith.constant 0 : i32
    %c0_i32_0 = arith.constant 0 : i32
    return %arg0, %c0_i32 : i32, i32
  }
}

</mosaic_0001>

<bundles_post_ra>
// kernel: spatial_soft_argmax.1
= control target key start
LH: loop header
LB: loop body
LE: loop exit
PB: predicated region body
PF: predicated region fallthrough
CT: control target
= control target key end

     0   :  { %v29_v8 = vlaneseq  ;;  %vm62_vm0 = vcmask 7168   ;;  %vm65_vm1 = vcmask 15368   ;;  %s111_s0 = inlined_call_operand.vmem [shape: f32[8,256], index: 0, kind: input, shape index: {}]   ;;  %s112_s1 = inlined_call_operand.vmem [shape: f32[2,256], index: 1, kind: input, shape index: {}]   ;;  %s113_s2 = inlined_call_operand.vmem [shape: f32[8,2], index: 2, kind: output, shape index: {}]  }
   0x1   :  { %v11_v0 = vld [vmem:[%s111_s0] sm:$0xff]  ;;  %v12_v1 = vld [vmem:[%s111_s0 + $0x8] sm:$0xff] }
   0x2   :  { %v13_v2 = vmax.f32 %v11_v0, %v12_v1  ;;  %v30_v9 = vshrl.u32 %v29_v8, 7  ;;  %v22_v11 = vld [vmem:[%s112_s1] ss:$2 sm:$0x3] }
   0x3   :  { %v71_v14 = vld [vmem:[%s112_s1 + $0x1] ss:$2 sm:$0x3] }
   0x4   :  { %14 = vmax.xlane.f32.xlu0 %v13_v2  ;;  %v31_v10 = vsub.s32 0, %v30_v9  ;;  %v35_v12 = vsub.s32 1, %v30_v9 }
   0x6   :  { %v32_v13 = vrot.slane %v22_v11, %v31_v10  ;;  %v36_v15 = vrot.slane %v22_v11, %v35_v12  ;;  %v48_v17 = vrot.slane %v71_v14, %v31_v10  ;;  %v52_v18 = vrot.slane %v71_v14, %v35_v12 }
  0x8d   :  { %v15_v3 = vpop.xlane.xlu0 %14 }
  0x8e   :  { %v16_v4 = vsub.f32 %v11_v0, %v15_v3  ;;  %v17_v5 = vsub.f32 %v12_v1, %v15_v3 }
  0x90   :  { %v18_v6 = vmul.f32 1.442695, %v16_v4  ;;  %v20_v7 = vmul.f32 1.442695, %v17_v5 }
  0x92   :  { %72 = vpow2.f32 %v18_v6 }
  0x93   :  { %74 = vpow2.f32 %v20_v7 }
  0x9f   :  { %v73_v16 = vpop.eup %72 }
  0xa0   :  { %v75_v19 = vpop.eup %74  ;;  %v39_v20 = vmul.f32 %v73_v16, %v32_v13  ;;  %v55_v24 = vmul.f32 %v73_v16, %v48_v17 }
  0xa1   :  { %v25_v21 = vadd.f32 %v75_v19, %v73_v16  ;;  %v40_v22 = vmul.f32 %v75_v19, %v36_v15  ;;  %v56_v25 = vmul.f32 %v75_v19, %v52_v18 }
  0xa3   :  { %26 = vadd.xlane.f32.xlu0 %v25_v21  ;;  %v41_v23 = vadd.f32 %v40_v22, %v39_v20  ;;  %v57_v26 = vadd.f32 %v56_v25, %v55_v24 }
  0xa5   :  { %42 = vadd.xlane.f32.xlu1 %v41_v23 }
  0xa9   :  { %58 = vadd.xlane.f32.xlu1 %v57_v26 }
 0x12c   :  { %v27_v27 = vpop.xlane.xlu0 %26 }
 0x12d   :  { %76 = vrcp.f32 %v27_v27 }
 0x12e   :  { %v43_v28 = vpop.xlane.xlu1 %42 }
 0x132   :  { %v59_v30 = vpop.xlane.xlu1 %58 }
 0x13a   :  { %v77_v29 = vpop.eup %76 }
 0x13b   :  { %v61_v31 = vmul.f32 %v77_v29, %v43_v28  ;;  %v64_v32 = vmul.f32 %v77_v29, %v59_v30 }
 0x13d   :  { %63 = vst.msk [vmem:[%s113_s2] sm:$0xff] %vm62_vm0, %v61_v31 }
 0x13e   :  { %66 = vst.msk [vmem:[%s113_s2] sm:$0xff] %vm65_vm1, %v64_v32 }

</bundles_post_ra>
